<compile_context>
chip_gen: v7x
topology: tpu7x:2x2x1
jax: 0.10.0
libtpu: 0.0.40
codegen_flags: <defaults>
</compile_context>

<pallas_src>
import jax
import jax.numpy as jnp
from jax.experimental import pallas as pl
from jax.experimental.pallas import tpu as pltpu

VOCAB = 128      # lane-dense vocabulary for the one-hot-count matmul
HIDDEN = 128     # lane-dense hidden size
SEQ = 8
B_MENTIONS = 8
B_ENTITIES = 8


# ---------------------------------------------------------------------------
# Fused kernel: encode(mentions) + encode(entities) + scaled similarity
# ---------------------------------------------------------------------------
def _botha_fused_kernel(scale_ref,
                        m_toks_ref, m_att_ref, e_toks_ref, e_att_ref,
                        m_embed_ref, m_w_ref, m_b_ref,
                        e_embed_ref, e_w_ref, e_b_ref,
                        o_ref):
    def encode(toks, att, embed, pool_w, pool_b):
        att_f = att.astype(jnp.float32)                               # [B, S]
        vocab = embed.shape[0]
        # Fold the attention mask into the ids: masked positions become -1 and
        # never match the vocab iota, so their one-hot row is all zeros.
        toks_m = jnp.where(att > 0, toks, -1)                          # [B, S]
        vocab_ids = jax.lax.broadcasted_iota(jnp.int32, (1, 1, vocab), 2)
        onehot = (toks_m[:, :, None] == vocab_ids).astype(jnp.float32)  # [B,S,V]
        counts = jnp.sum(onehot, axis=1)                               # [B, V]
        inv_denom = 1.0 / jnp.maximum(jnp.sum(att_f, axis=1, keepdims=True), 1.0)
        # Gather + masked-mean pooling fused into one MXU matmul.
        hidden = jnp.dot(counts, embed,
                         preferred_element_type=jnp.float32) * inv_denom  # [B, H]
        pooled = jnp.tanh(jnp.dot(hidden, pool_w,
                                  preferred_element_type=jnp.float32) + pool_b)
        # L2 normalize (torch.nn.functional.normalize, p=2, eps=1e-12):
        # x * rsqrt(max(||x||^2, eps^2)) == x / max(||x||, eps).
        nsq = jnp.sum(pooled * pooled, axis=1, keepdims=True)
        return pooled * jax.lax.rsqrt(jnp.maximum(nsq, 1e-24))

    m = encode(m_toks_ref[...], m_att_ref[...],
               m_embed_ref[...], m_w_ref[...], m_b_ref[...])
    e = encode(e_toks_ref[...], e_att_ref[...],
               e_embed_ref[...], e_w_ref[...], e_b_ref[...])

    # Fold logit_multiplier into the (smaller) mentions operand, then do an
    # NT matmul on the MXU (no explicit transpose of entities).
    m_scaled = m * scale_ref[0]
    o_ref[...] = jax.lax.dot_general(
        m_scaled, e,
        dimension_numbers=(((1,), (1,)), ((), ())),
        preferred_element_type=jnp.float32,
    )


@jax.jit
def botha_forward(mentions, entities, params):
    """mentions/entities: [B, 2, S] int32 -> similarity [Bm, Be] float32."""
    m_toks, m_att = mentions[:, 0, :], mentions[:, 1, :]
    e_toks, e_att = entities[:, 0, :], entities[:, 1, :]
    Bm, Be = m_toks.shape[0], e_toks.shape[0]
    H = params["mentions"]["pool_w"].shape[1]

    vmem = pl.BlockSpec(memory_space=pltpu.MemorySpace.VMEM)
    smem = pl.BlockSpec(memory_space=pltpu.MemorySpace.SMEM)

    return pl.pallas_call(
        _botha_fused_kernel,
        out_shape=jax.ShapeDtypeStruct((Bm, Be), jnp.float32),
        in_specs=[smem] + [vmem] * 10,
        out_specs=vmem,
    )(
        params["logit_multiplier"].reshape(1),
        m_toks, m_att, e_toks, e_att,
        params["mentions"]["embed"],
        params["mentions"]["pool_w"],
        params["mentions"]["pool_b"].reshape(1, H),
        params["entities"]["embed"],
        params["entities"]["pool_w"],
        params["entities"]["pool_b"].reshape(1, H),
    )


# ---------------------------------------------------------------------------
# Synthetic encoder parameters standing in for mentions_model / entities_model
# ---------------------------------------------------------------------------
# TODO(synk): the real mentions_model/entities_model are full transformer
# encoders passed into __init__; they are replaced here by embedding lookup +
# masked mean pooling + dense/tanh pooler, all executed inside the fused kernel.
def init_params(key):
    k = jax.random.split(key, 6)

    def enc_params(ke, kw, kb):
        return {
            "embed": jax.random.normal(ke, (VOCAB, HIDDEN), jnp.float32) * 0.1,
            "pool_w": jax.random.normal(kw, (HIDDEN, HIDDEN), jnp.float32) * 0.1,
            "pool_b": jax.random.normal(kb, (HIDDEN,), jnp.float32) * 0.01,
        }

    return {
        "mentions": enc_params(k[0], k[1], k[2]),
        "entities": enc_params(k[3], k[4], k[5]),
        # nn.Parameter(torch.tensor(1.0))
        "logit_multiplier": jnp.float32(1.0),
    }


# Pure-JAX reference (same math, XLA ops) for a correctness check.
def _reference(mentions, entities, params):
    def enc(data, p):
        toks = data[:, 0, :]
        att = data[:, 1, :].astype(jnp.float32)
        emb = jnp.take(p["embed"], toks, axis=0)                   # [B, S, H]
        denom = jnp.maximum(att.sum(axis=1, keepdims=True), 1.0)
        hidden = (emb * att[..., None]).sum(axis=1) / denom
        pooled = jnp.tanh(hidden @ p["pool_w"] + p["pool_b"])
        norm = jnp.sqrt(jnp.sum(pooled * pooled, axis=1, keepdims=True))
        return pooled / jnp.maximum(norm, 1e-12)

    m = enc(mentions, params["mentions"])
    e = enc(entities, params["entities"])
    return (m @ e.T) * params["logit_multiplier"]


if __name__ == "__main__":
    key = jax.random.PRNGKey(0)
    kp, km_tok, km_att, ke_tok, ke_att = jax.random.split(key, 5)

    params = init_params(kp)

    m_toks = jax.random.randint(km_tok, (B_MENTIONS, SEQ), 0, VOCAB, jnp.int32)
    m_att = (jax.random.uniform(km_att, (B_MENTIONS, SEQ)) > 0.2).astype(jnp.int32)
    e_toks = jax.random.randint(ke_tok, (B_ENTITIES, SEQ), 0, VOCAB, jnp.int32)
    e_att = (jax.random.uniform(ke_att, (B_ENTITIES, SEQ)) > 0.2).astype(jnp.int32)

    mentions = jnp.stack([m_toks, m_att], axis=1)  # [B, 2, S]
    entities = jnp.stack([e_toks, e_att], axis=1)  # [B, 2, S]

    out = botha_forward(mentions, entities, params)
    jax.block_until_ready(out)

    assert out.shape == (B_MENTIONS, B_ENTITIES)
    assert bool(jnp.all(jnp.isfinite(out)))

    ref = _reference(mentions, entities, params)
    assert bool(jnp.allclose(out, ref, atol=1e-3, rtol=1e-3)), "mismatch vs reference"

    print("KERNEL_OK")
</pallas_src>

<mosaic_0001>
module attributes {stable_mosaic.version = 11 : i64} {
  func.func @_botha_fused_kernel(%arg0: memref<1xf32, #tpu.memory_space<smem>>, %arg1: memref<8x8xi32, #tpu.memory_space<vmem>>, %arg2: memref<8x8xi32, #tpu.memory_space<vmem>>, %arg3: memref<8x8xi32, #tpu.memory_space<vmem>>, %arg4: memref<8x8xi32, #tpu.memory_space<vmem>>, %arg5: memref<128x128xf32, #tpu.memory_space<vmem>>, %arg6: memref<128x128xf32, #tpu.memory_space<vmem>>, %arg7: memref<1x128xf32, #tpu.memory_space<vmem>>, %arg8: memref<128x128xf32, #tpu.memory_space<vmem>>, %arg9: memref<128x128xf32, #tpu.memory_space<vmem>>, %arg10: memref<1x128xf32, #tpu.memory_space<vmem>>, %arg11: memref<8x8xf32, #tpu.memory_space<vmem>>) attributes {dimension_semantics = [], scalar_prefetch = 0 : i64, scratch_operands = 0 : i64, tpu.core_type = #tpu.core_type<tc>} {
    %c0 = arith.constant 0 : index
    %c0_0 = arith.constant 0 : index
    %0 = vector.load %arg1[%c0, %c0_0] : memref<8x8xi32, #tpu.memory_space<vmem>>, vector<8x8xi32>
    %c0_1 = arith.constant 0 : index
    %c0_2 = arith.constant 0 : index
    %1 = vector.load %arg2[%c0_1, %c0_2] : memref<8x8xi32, #tpu.memory_space<vmem>>, vector<8x8xi32>
    %c0_3 = arith.constant 0 : index
    %c0_4 = arith.constant 0 : index
    %2 = vector.load %arg5[%c0_3, %c0_4] : memref<128x128xf32, #tpu.memory_space<vmem>>, vector<128x128xf32>
    %c0_5 = arith.constant 0 : index
    %c0_6 = arith.constant 0 : index
    %3 = vector.load %arg6[%c0_5, %c0_6] : memref<128x128xf32, #tpu.memory_space<vmem>>, vector<128x128xf32>
    %c0_7 = arith.constant 0 : index
    %c0_8 = arith.constant 0 : index
    %4 = vector.load %arg7[%c0_7, %c0_8] : memref<1x128xf32, #tpu.memory_space<vmem>>, vector<1x128xf32>
    %5 = arith.sitofp %1 : vector<8x8xi32> to vector<8x8xf32>
    %c0_i32 = arith.constant 0 : i32
    %6 = vector.broadcast %c0_i32 : i32 to vector<8x8xi32>
    %7 = arith.cmpi sgt, %1, %6 : vector<8x8xi32>
    %c-1_i32 = arith.constant -1 : i32
    %8 = vector.broadcast %c-1_i32 : i32 to vector<8x8xi32>
    %9 = arith.select %7, %0, %8 : vector<8x8xi1>, vector<8x8xi32>
    %10 = tpu.iota {dimensions = array<i32: 2>} : vector<1x1x128xi32>
    %11 = vector.shape_cast %9 : vector<8x8xi32> to vector<8x8x1xi32>
    %12 = vector.broadcast %11 : vector<8x8x1xi32> to vector<8x8x128xi32>
    %13 = vector.broadcast %10 : vector<1x1x128xi32> to vector<8x8x128xi32>
    %14 = arith.cmpi eq, %12, %13 : vector<8x8x128xi32>
    %15 = arith.extui %14 : vector<8x8x128xi1> to vector<8x8x128xi32>
    %16 = arith.sitofp %15 : vector<8x8x128xi32> to vector<8x8x128xf32>
    %cst = arith.constant dense<0.000000e+00> : vector<8x128xf32>
    %17 = vector.multi_reduction <add>, %16, %cst [1] : vector<8x8x128xf32> to vector<8x128xf32>
    %cst_9 = arith.constant dense<0.000000e+00> : vector<8xf32>
    %18 = vector.multi_reduction <add>, %5, %cst_9 [1] : vector<8x8xf32> to vector<8xf32>
    %19 = vector.shape_cast %18 : vector<8xf32> to vector<8x1xf32>
    %cst_10 = arith.constant 1.000000e+00 : f32
    %20 = vector.broadcast %cst_10 : f32 to vector<8x1xf32>
    %21 = arith.maximumf %19, %20 : vector<8x1xf32>
    %cst_11 = arith.constant 1.000000e+00 : f32
    %22 = vector.broadcast %cst_11 : f32 to vector<8x1xf32>
    %23 = arith.divf %22, %21 : vector<8x1xf32>
    %cst_12 = arith.constant dense<0.000000e+00> : vector<8x128xf32>
    %24 = tpu.matmul %17, %2, %cst_12 {dimension_numbers = #tpu.dot_dimension_numbers<[1], [0], [0], [1], [0, 0, 1, 1], [], []>} : vector<8x128xf32>, vector<128x128xf32>, vector<8x128xf32> -> vector<8x128xf32>
    %25 = vector.broadcast %23 : vector<8x1xf32> to vector<8x128xf32>
    %26 = arith.mulf %24, %25 : vector<8x128xf32>
    %cst_13 = arith.constant dense<0.000000e+00> : vector<8x128xf32>
    %27 = tpu.matmul %26, %3, %cst_13 {dimension_numbers = #tpu.dot_dimension_numbers<[1], [0], [0], [1], [0, 0, 1, 1], [], []>} : vector<8x128xf32>, vector<128x128xf32>, vector<8x128xf32> -> vector<8x128xf32>
    %28 = vector.broadcast %4 : vector<1x128xf32> to vector<8x128xf32>
    %29 = arith.addf %27, %28 : vector<8x128xf32>
    %30 = math.tanh %29 : vector<8x128xf32>
    %31 = arith.mulf %30, %30 : vector<8x128xf32>
    %cst_14 = arith.constant dense<0.000000e+00> : vector<8xf32>
    %32 = vector.multi_reduction <add>, %31, %cst_14 [1] : vector<8x128xf32> to vector<8xf32>
    %33 = vector.shape_cast %32 : vector<8xf32> to vector<8x1xf32>
    %cst_15 = arith.constant 1.000000e-24 : f32
    %34 = vector.broadcast %cst_15 : f32 to vector<8x1xf32>
    %35 = arith.maximumf %33, %34 : vector<8x1xf32>
    %36 = math.rsqrt %35 : vector<8x1xf32>
    %37 = vector.broadcast %36 : vector<8x1xf32> to vector<8x128xf32>
    %38 = arith.mulf %30, %37 : vector<8x128xf32>
    %c0_16 = arith.constant 0 : index
    %c0_17 = arith.constant 0 : index
    %39 = vector.load %arg3[%c0_16, %c0_17] : memref<8x8xi32, #tpu.memory_space<vmem>>, vector<8x8xi32>
    %c0_18 = arith.constant 0 : index
    %c0_19 = arith.constant 0 : index
    %40 = vector.load %arg4[%c0_18, %c0_19] : memref<8x8xi32, #tpu.memory_space<vmem>>, vector<8x8xi32>
    %c0_20 = arith.constant 0 : index
    %c0_21 = arith.constant 0 : index
    %41 = vector.load %arg8[%c0_20, %c0_21] : memref<128x128xf32, #tpu.memory_space<vmem>>, vector<128x128xf32>
    %c0_22 = arith.constant 0 : index
    %c0_23 = arith.constant 0 : index
    %42 = vector.load %arg9[%c0_22, %c0_23] : memref<128x128xf32, #tpu.memory_space<vmem>>, vector<128x128xf32>
    %c0_24 = arith.constant 0 : index
    %c0_25 = arith.constant 0 : index
    %43 = vector.load %arg10[%c0_24, %c0_25] : memref<1x128xf32, #tpu.memory_space<vmem>>, vector<1x128xf32>
    %44 = arith.sitofp %40 : vector<8x8xi32> to vector<8x8xf32>
    %c0_i32_26 = arith.constant 0 : i32
    %45 = vector.broadcast %c0_i32_26 : i32 to vector<8x8xi32>
    %46 = arith.cmpi sgt, %40, %45 : vector<8x8xi32>
    %c-1_i32_27 = arith.constant -1 : i32
    %47 = vector.broadcast %c-1_i32_27 : i32 to vector<8x8xi32>
    %48 = arith.select %46, %39, %47 : vector<8x8xi1>, vector<8x8xi32>
    %49 = tpu.iota {dimensions = array<i32: 2>} : vector<1x1x128xi32>
    %50 = vector.shape_cast %48 : vector<8x8xi32> to vector<8x8x1xi32>
    %51 = vector.broadcast %50 : vector<8x8x1xi32> to vector<8x8x128xi32>
    %52 = vector.broadcast %49 : vector<1x1x128xi32> to vector<8x8x128xi32>
    %53 = arith.cmpi eq, %51, %52 : vector<8x8x128xi32>
    %54 = arith.extui %53 : vector<8x8x128xi1> to vector<8x8x128xi32>
    %55 = arith.sitofp %54 : vector<8x8x128xi32> to vector<8x8x128xf32>
    %cst_28 = arith.constant dense<0.000000e+00> : vector<8x128xf32>
    %56 = vector.multi_reduction <add>, %55, %cst_28 [1] : vector<8x8x128xf32> to vector<8x128xf32>
    %cst_29 = arith.constant dense<0.000000e+00> : vector<8xf32>
    %57 = vector.multi_reduction <add>, %44, %cst_29 [1] : vector<8x8xf32> to vector<8xf32>
    %58 = vector.shape_cast %57 : vector<8xf32> to vector<8x1xf32>
    %cst_30 = arith.constant 1.000000e+00 : f32
    %59 = vector.broadcast %cst_30 : f32 to vector<8x1xf32>
    %60 = arith.maximumf %58, %59 : vector<8x1xf32>
    %cst_31 = arith.constant 1.000000e+00 : f32
    %61 = vector.broadcast %cst_31 : f32 to vector<8x1xf32>
    %62 = arith.divf %61, %60 : vector<8x1xf32>
    %cst_32 = arith.constant dense<0.000000e+00> : vector<8x128xf32>
    %63 = tpu.matmul %56, %41, %cst_32 {dimension_numbers = #tpu.dot_dimension_numbers<[1], [0], [0], [1], [0, 0, 1, 1], [], []>} : vector<8x128xf32>, vector<128x128xf32>, vector<8x128xf32> -> vector<8x128xf32>
    %64 = vector.broadcast %62 : vector<8x1xf32> to vector<8x128xf32>
    %65 = arith.mulf %63, %64 : vector<8x128xf32>
    %cst_33 = arith.constant dense<0.000000e+00> : vector<8x128xf32>
    %66 = tpu.matmul %65, %42, %cst_33 {dimension_numbers = #tpu.dot_dimension_numbers<[1], [0], [0], [1], [0, 0, 1, 1], [], []>} : vector<8x128xf32>, vector<128x128xf32>, vector<8x128xf32> -> vector<8x128xf32>
    %67 = vector.broadcast %43 : vector<1x128xf32> to vector<8x128xf32>
    %68 = arith.addf %66, %67 : vector<8x128xf32>
    %69 = math.tanh %68 : vector<8x128xf32>
    %70 = arith.mulf %69, %69 : vector<8x128xf32>
    %cst_34 = arith.constant dense<0.000000e+00> : vector<8xf32>
    %71 = vector.multi_reduction <add>, %70, %cst_34 [1] : vector<8x128xf32> to vector<8xf32>
    %72 = vector.shape_cast %71 : vector<8xf32> to vector<8x1xf32>
    %cst_35 = arith.constant 1.000000e-24 : f32
    %73 = vector.broadcast %cst_35 : f32 to vector<8x1xf32>
    %74 = arith.maximumf %72, %73 : vector<8x1xf32>
    %75 = math.rsqrt %74 : vector<8x1xf32>
    %76 = vector.broadcast %75 : vector<8x1xf32> to vector<8x128xf32>
    %77 = arith.mulf %69, %76 : vector<8x128xf32>
    %c0_36 = arith.constant 0 : index
    %78 = memref.load %arg0[%c0_36] : memref<1xf32, #tpu.memory_space<smem>>
    %79 = vector.broadcast %78 : f32 to vector<8x128xf32>
    %80 = arith.mulf %38, %79 : vector<8x128xf32>
    %cst_37 = arith.constant dense<0.000000e+00> : vector<8x8xf32>
    %81 = tpu.matmul %80, %77, %cst_37 {dimension_numbers = #tpu.dot_dimension_numbers<[1], [1], [0], [0], [0, 0, 1, 0], [], []>} : vector<8x128xf32>, vector<8x128xf32>, vector<8x8xf32> -> vector<8x8xf32>
    %c0_38 = arith.constant 0 : index
    %c0_39 = arith.constant 0 : index
    %82 = vector.load %arg11[%c0_38, %c0_39] : memref<8x8xf32, #tpu.memory_space<vmem>>, vector<8x8xf32>
    tpu.vector_store %arg11[%c0_38, %c0_39], %81 {strides = array<i32>} : memref<8x8xf32, #tpu.memory_space<vmem>>, vector<8x8xf32>,
    return
  }
}

</mosaic_0001>

<bundles_post_ra>
// kernel: botha_forward.1
= control target key start
LH: loop header
LB: loop body
LE: loop exit
PB: predicated region body
PF: predicated region fallthrough
CT: control target
= control target key end

     0   :  { %17 = vsyncpa [#allocation4], 0  ;;  %s1677_s0 = inlined_call_operand.<no memory space> [shape: f32[1], index: 0, kind: input, shape index: {}]   ;;  %s1678_s1 = inlined_call_operand.vmem [shape: s32[8,8], index: 1, kind: input, shape index: {}]   ;;  %s1679_s2 = inlined_call_operand.vmem [shape: s32[8,8], index: 2, kind: input, shape index: {}]   ;;  %s1680_s3 = inlined_call_operand.vmem [shape: s32[8,8], index: 3, kind: input, shape index: {}]   ;;  %s1681_s4 = inlined_call_operand.vmem [shape: s32[8,8], index: 4, kind: input, shape index: {}]   ;;  %s1682_s5 = inlined_call_operand.vmem [shape: f32[128,128], index: 5, kind: input, shape index: {}]   ;;  %s1683_s6 = inlined_call_operand.hbm [shape: f32[128,128], index: 6, kind: input, shape index: {}]   ;;  %s1684_s7 = inlined_call_operand.vmem [shape: f32[1,128], index: 7, kind: input, shape index: {}]   ;;  %s1685_s8 = inlined_call_operand.hbm [shape: f32[128,128], index: 8, kind: input, shape index: {}]   ;;  %s1686_s9 = inlined_call_operand.hbm [shape: f32[128,128], index: 9, kind: input, shape index: {}]   ;;  %s1687_s10 = inlined_call_operand.hbm [shape: f32[1,128], index: 10, kind: input, shape index: {}]   ;;  %s1688_s11 = inlined_call_operand.hbm [shape: f32[8,8], index: 11, kind: output, shape index: {}]  }
   0x1   :  { %18 = vsyncpa [#allocation7], 0 }
   0x2   :  { %19 = vsyncpa [#allocation10], 0 }
   0x3   :  { %20 = vsyncpa [#allocation5], 0  ;;  %s1347_s17 = smov [#allocation6]   ;;  %s1348_s19 = smov [#allocation3]  }
   0x4   :  { %s52_s18 = sshll.u32 %s1347_s17, 4  ;;  %s38_s20 = sshll.u32 %s1348_s19, 4  ;;  %s53_s18 = int_to_ptr.vmem [resolvable:$true] %s52_s18  ;;  %s1417_s20 = int_to_ptr.vmem [resolvable:$true] %s38_s20 }
   0x5   :  { %s1229_s23 = scalar_lea.hbm %s1685_s8, 2048 }
   0x6   :  { %p1230_p0 = scmp.ne.s32.totalorder %s1685_s8, %s1229_s23  ;;  %p1233_p1 = scmp.lt.u32.totalorder %s1229_s23, %s1685_s8 }
   0x8   :  { %p1235_p2 = pnand %p1233_p1, %p1230_p0 }
   0xa   :  { %1238 = shalt.err (!%p1235_p2)
}
   0xb   :  { %s1239_s28 = scalar_lea.vmem %s53_s18, 2048  ;;  %p1244_p4 = scmp.lt.s32.totalorder %s53_s18, %s53_s18 }
   0xc   :  { %p1240_p3 = scmp.ne.s32.totalorder %s53_s18, %s1239_s28  ;;  %p1245_p5 = scmp.lt.s32.totalorder %s1239_s28, %s1239_s28 }
   0xe   :  { %p1246_p6 = por %p1245_p5, %p1244_p4 }
  0x10   :  { %p1247_p7 = pnand %p1246_p6, %p1240_p3 }
  0x12   :  { %1250 = shalt.err (!%p1247_p7)
}
  0x13   :  { %s1349_s29 = smov 128   ;;  %s1350_s30 = smov 8  }
  0x14   :  { %58 = dma.hbm_to_vmem [thread:$0]  %s1685_s8, 2048, %s53_s18, [#allocation7], %s1349_s29, %s1349_s29, %s1350_s30  }
  0x15   :  { %s1251_s16 = scalar_lea.hbm %s1683_s6, 2048 }
  0x16   :  { %p1252_p8 = scmp.ne.s32.totalorder %s1683_s6, %s1251_s16  ;;  %p1255_p9 = scmp.lt.u32.totalorder %s1251_s16, %s1683_s6 }
  0x18   :  { %p1257_p10 = pnand %p1255_p9, %p1252_p8 }
  0x1a   :  { %1260 = shalt.err (!%p1257_p10)
}
  0x1b   :  { %s1261_s23 = scalar_lea.vmem %s1417_s20, 2048  ;;  %p1266_p12 = scmp.lt.s32.totalorder %s1417_s20, %s1417_s20 }
  0x1c   :  { %p1262_p11 = scmp.ne.s32.totalorder %s1417_s20, %s1261_s23  ;;  %p1267_p13 = scmp.lt.s32.totalorder %s1261_s23, %s1261_s23 }
  0x1e   :  { %p1268_p0 = por %p1267_p13, %p1266_p12 }
  0x20   :  { %p1269_p1 = pnand %p1268_p0, %p1262_p11 }
  0x22   :  { %1272 = shalt.err (!%p1269_p1)
}
  0x23   :  { %44 = dma.hbm_to_vmem [thread:$0]  %s1683_s6, 2048, %s1417_s20, [#allocation4], %s1349_s29, %s1349_s29, %s1350_s30  }
  0x24   :  { %s1351_s24 = smov [#allocation8]   ;;  %s1352_s26 = smov [#allocation9]  }
  0x25   :  { %s64_s25 = sshll.u32 %s1351_s24, 4  ;;  %s77_s27 = sshll.u32 %s1352_s26, 4  ;;  %s65_s25 = int_to_ptr.vmem [resolvable:$true] %s64_s25  ;;  %s78_s27 = int_to_ptr.vmem [resolvable:$true] %s77_s27 }
  0x26   :  { %s1273_s13 = scalar_lea.hbm %s1686_s9, 2048 }
  0x27   :  { %p1274_p2 = scmp.ne.s32.totalorder %s1686_s9, %s1273_s13  ;;  %p1277_p3 = scmp.lt.u32.totalorder %s1273_s13, %s1686_s9 }
  0x29   :  { %p1279_p4 = pnand %p1277_p3, %p1274_p2 }
  0x2b   :  { %1282 = shalt.err (!%p1279_p4)
}
  0x2c   :  { %s1283_s6 = scalar_lea.vmem %s65_s25, 2048  ;;  %p1288_p6 = scmp.lt.s32.totalorder %s65_s25, %s65_s25 }
  0x2d   :  { %p1284_p5 = scmp.ne.s32.totalorder %s65_s25, %s1283_s6  ;;  %p1289_p7 = scmp.lt.s32.totalorder %s1283_s6, %s1283_s6 }
  0x2f   :  { %p1290_p8 = por %p1289_p7, %p1288_p6 }
  0x31   :  { %p1291_p9 = pnand %p1290_p8, %p1284_p5 }
  0x33   :  { %1294 = shalt.err (!%p1291_p9)
}
  0x34   :  { %70 = dma.hbm_to_vmem [thread:$0]  %s1686_s9, 2048, %s65_s25, [#allocation7], %s1349_s29, %s1349_s29, %s1350_s30  }
  0x35   :  { %s1295_s23 = scalar_lea.hbm %s1687_s10, 16 }
  0x36   :  { %p1296_p10 = scmp.ne.s32.totalorder %s1687_s10, %s1295_s23  ;;  %p1299_p11 = scmp.lt.u32.totalorder %s1295_s23, %s1687_s10 }
  0x38   :  { %p1301_p12 = pnand %p1299_p11, %p1296_p10 }
  0x3a   :  { %1304 = shalt.err (!%p1301_p12)
}
  0x3b   :  { %s1305_s28 = scalar_lea.vmem %s78_s27, 16  ;;  %s1309_s12 = scalar_lea.vmem %s78_s27, 32 }
  0x3c   :  { %p1306_p13 = scmp.ne.s32.totalorder %s78_s27, %s1305_s28  ;;  %p1310_p0 = scmp.lt.s32.totalorder %s78_s27, %s78_s27 }
  0x3d   :  { %p1311_p1 = scmp.lt.s32.totalorder %s1309_s12, %s1305_s28 }
  0x3f   :  { %p1312_p2 = por %p1311_p1, %p1310_p0 }
  0x41   :  { %p1313_p3 = pnand %p1312_p2, %p1306_p13 }
  0x43   :  { %1316 = shalt.err (!%p1313_p3)
}
  0x44   :  { %80 = dma.hbm_to_vmem [thread:$0]  %s1687_s10, 16, %s78_s27, [#allocation10]  }
  0x45   :  { %1339 = dma.done.wait [#allocation4], 2048  }
  0x46   :  { %1340 = vsyncadd [#allocation4], 4294965248 }
  0x47   :  { %1341 = dma.done.wait [#allocation7], 4096  }
  0x48   :  { %1342 = vsyncadd [#allocation7], 4294963200 }
  0x49   :  { %1343 = dma.done.wait [#allocation10], 16  }
  0x4a   :  { %1344 = vsyncadd [#allocation10], 4294967280  ;;  %v131_v0 = vlaneseq  ;;  %v1353_v1 = vmov 0.0|0.0   ;;  %v93_v5 = vld [vmem:[%s1678_s1] sm:$0xff]  ;;  %v96_v10 = vld [vmem:[%s1682_s5 + $0x8] sm:$0xff]  ;;  %vm1354_vm2 = vmmov 0  }
  0x4b   :  { %1111 = vmatprep.subr.bf16.mxu0 %v1353_v1  ;;  %1135 = vmatprep.subr.bf16.mxu1 %v1353_v1  ;;  %v1494_v6 = vld [vmem:[%s1679_s2] sm:$0xff]  ;;  %v97_v13 = vld [vmem:[%s1682_s5 + $0x10] sm:$0xff]  ;;  %v98_v14 = vld [vmem:[%s1682_s5 + $0x18] sm:$0xff]  ;;  %v1355_v49 = vmov 0.0   ;;  %vm261_vm3 = vcmask 64512   ;;  %vm276_vm14 = vcmask 1041409  }
  0x4c   :  { %v1484_v2 = vshrl.u32 %v131_v0, 7  ;;  %vm129_vm0 = vcmp.gt.s32.totalorder %v1494_v6, 0  ;;  %v95_v9 = vld [vmem:[%s1682_s5] sm:$0xff]  ;;  %v1115_v21 = vpack.c.bf16 %v98_v14, %v97_v13  ;;  %v100_v23 = vld [vmem:[%s1682_s5 + $0x28] sm:$0xff]  ;;  %v101_v30 = vld [vmem:[%s1682_s5 + $0x30] sm:$0xff]  ;;  %998 = vmatprep.mubr.msk.f32.mxu0 %vm1354_vm2, %v1355_v49  ;;  %1033 = vmatprep.mubr.msk.f32.mxu1 %vm1354_vm2, %v1355_v49  ;;  %v128_v58 = vcvt.s32.f32 %v1494_v6  ;;  %s1356_s22 = smov [#allocation11]  }
  0x4d   :  { %v130_v11 = vsel %vm129_vm0, %v93_v5, 4294967295  ;;  %v1112_v12 = vpack.c.bf16 %v96_v10, %v95_v9  ;;  %v99_v22 = vld [vmem:[%s1682_s5 + $0x20] sm:$0xff]  ;;  %v102_v31 = vld [vmem:[%s1682_s5 + $0x38] sm:$0xff]  ;;  %v104_v37 = vld [vmem:[%s1682_s5 + $0x48] sm:$0xff]  ;;  %vm278_vm0 = vcmask 1042434   ;;  %s867_s23 = sshll.u32 %s1356_s22, 4  ;;  %s868_s23 = int_to_ptr.vmem [resolvable:$true] %s867_s23 }
  0x4e   :  { %v149_v3 = vsub.s32 2, %v1484_v2  ;;  %v135_v4 = vsub.s32 0, %v1484_v2  ;;  %v156_v7 = vsub.s32 3, %v1484_v2  ;;  %v142_v8 = vsub.s32 1, %v1484_v2  ;;  %v1525_v24 = vld [vmem:[%s1681_s4] sm:$0xff]  ;;  %v105_v42 = vld [vmem:[%s1682_s5 + $0x50] sm:$0xff]  ;;  %p1322_p5 = scmp.lt.s32.totalorder %s868_s23, %s868_s23 }
  0x4f   :  { %v170_v17 = vsub.s32 5, %v1484_v2  ;;  %1113 = vmatpush3.bf16.msra.mxu0 %v1112_v12  ;;  %v163_v20 = vsub.s32 4, %v1484_v2  ;;  %v1118_v25 = vpack.c.bf16 %v100_v23, %v99_v22  ;;  %v184_v28 = vsub.s32 7, %v1484_v2  ;;  %v445_v32 = vld [vmem:[%s1680_s3] sm:$0xff]  ;;  %v106_v43 = vld [vmem:[%s1682_s5 + $0x58] sm:$0xff]  ;;  %v108_v48 = vld [vmem:[%s1682_s5 + $0x68] sm:$0xff] }
  0x50   :  { %v150_v15 = vrot.slane %v130_v11, %v149_v3  ;;  %v136_v16 = vrot.slane %v130_v11, %v135_v4  ;;  %v157_v18 = vrot.slane %v130_v11, %v156_v7  ;;  %v143_v19 = vrot.slane %v130_v11, %v142_v8  ;;  %1114 = vmatprep.subr.bf16.mxu0 %v1353_v1  ;;  %v103_v36 = vld [vmem:[%s1682_s5 + $0x40] sm:$0xff]  ;;  %v109_v53 = vld [vmem:[%s1682_s5 + $0x70] sm:$0xff]  ;;  %v110_v54 = vld [vmem:[%s1682_s5 + $0x78] sm:$0xff]  ;;  %s1317_s8 = scalar_lea.vmem %s868_s23, 128 }
  0x51   :  { %v171_v26 = vrot.slane %v130_v11, %v170_v17  ;;  %v164_v27 = vrot.slane %v130_v11, %v163_v20  ;;  %v177_v29 = vsub.s32 6, %v1484_v2  ;;  %vm481_vm1 = vcmp.gt.s32.totalorder %v1525_v24, 0  ;;  %v107_v47 = vld [vmem:[%s1682_s5 + $0x60] sm:$0xff]  ;;  %v112_v60 = vld [vmem:[#allocation3 + $0x8] sm:$0xff]  ;;  %v113_v61 = vld [vmem:[#allocation3 + $0x10] sm:$0xff]  ;;  %p1318_p4 = scmp.ne.s32.totalorder %s868_s23, %s1317_s8  ;;  %p1323_p6 = scmp.lt.s32.totalorder %s1317_s8, %s1317_s8 }
  0x52   :  { %152 = vbcast.lane.b32.xlu1 %v150_v15, 256  ;;  %138 = vbcast.lane.b32.xlu0 %v136_v16, 256  ;;  %v1121_v33 = vpack.c.bf16 %v102_v31, %v101_v30  ;;  %v185_v34 = vrot.slane %v130_v11, %v184_v28  ;;  %v482_v38 = vsel %vm481_vm1, %v445_v32, 4294967295  ;;  %v1124_v39 = vpack.c.bf16 %v104_v37, %v103_v36  ;;  %v111_v59 = vld [vmem:[#allocation3] sm:$0xff]  ;;  %v114_v63 = vld [vmem:[#allocation3 + $0x18] sm:$0xff]  ;;  %v117_v9 = vld [vmem:[#allocation3 + $0x30] sm:$0xff] }
  0x53   :  { %1116 = vmatpush3.bf16.msra.mxu0 %v1115_v21  ;;  %v178_v35 = vrot.slane %v130_v11, %v177_v29  ;;  %v486_v40 = vrot.slane %v482_v38, %v135_v4  ;;  %v493_v41 = vrot.slane %v482_v38, %v142_v8  ;;  %v1127_v44 = vpack.c.bf16 %v106_v43, %v105_v42  ;;  %v115_v5 = vld [vmem:[#allocation3 + $0x20] sm:$0xff]  ;;  %v118_v10 = vld [vmem:[#allocation3 + $0x38] sm:$0xff]  ;;  %v120_v13 = vld [vmem:[#allocation3 + $0x48] sm:$0xff]  ;;  %p1324_p7 = por %p1323_p6, %p1322_p5 }
  0x54   :  { %1117 = vmatprep.subr.bf16.mxu0 %v1353_v1  ;;  %v500_v45 = vrot.slane %v482_v38, %v149_v3  ;;  %v507_v46 = vrot.slane %v482_v38, %v156_v7  ;;  %v1130_v50 = vpack.c.bf16 %v108_v48, %v107_v47  ;;  %v514_v51 = vrot.slane %v482_v38, %v163_v20  ;;  %v116_v7 = vld [vmem:[#allocation3 + $0x28] sm:$0xff]  ;;  %v119_v12 = vld [vmem:[#allocation3 + $0x40] sm:$0xff]  ;;  %v121_v15 = vld [vmem:[#allocation3 + $0x50] sm:$0xff] }
  0x55   :  { %v521_v52 = vrot.slane %v482_v38, %v170_v17  ;;  %v1133_v55 = vpack.c.bf16 %v110_v54, %v109_v53  ;;  %v528_v56 = vrot.slane %v482_v38, %v177_v29  ;;  %v535_v57 = vrot.slane %v482_v38, %v184_v28  ;;  %v122_v16 = vld [vmem:[#allocation3 + $0x58] sm:$0xff]  ;;  %v123_v17 = vld [vmem:[#allocation3 + $0x60] sm:$0xff]  ;;  %v125_v21 = vld [vmem:[#allocation3 + $0x70] sm:$0xff]  ;;  %p1325_p8 = pnand %p1324_p7, %p1318_p4 }
  0x56   :  { %159 = vbcast.lane.b32.xlu1 %v157_v18, 256  ;;  %145 = vbcast.lane.b32.xlu0 %v143_v19, 256  ;;  %v1136_v62 = vpack.c.bf16 %v112_v60, %v111_v59  ;;  %v262_v2 = vsel %vm261_vm3, %v128_v58, 0.0  ;;  %v480_v3 = vcvt.s32.f32 %v1525_v24  ;;  %v1139_v4 = vpack.c.bf16 %v114_v63, %v113_v61  ;;  %v124_v19 = vld [vmem:[#allocation3 + $0x68] sm:$0xff]  ;;  %v126_v22 = vld [vmem:[#allocation3 + $0x78] sm:$0xff] }
  0x57   :  { %1119 = vmatpush3.bf16.msra.mxu0 %v1118_v25  ;;  %v1142_v6 = vpack.c.bf16 %v116_v7, %v115_v5  ;;  %v1145_v11 = vpack.c.bf16 %v118_v10, %v117_v9  ;;  %v1148_v14 = vpack.c.bf16 %v120_v13, %v119_v12  ;;  %v1151_v18 = vpack.c.bf16 %v122_v16, %v121_v15 }
  0x58   :  { %1120 = vmatprep.subr.bf16.mxu0 %v1353_v1  ;;  %1137 = vmatpush3.bf16.msra.mxu1 %v1136_v62  ;;  %v611_v8 = vsel %vm261_vm3, %v480_v3, 0.0  ;;  %v1154_v20 = vpack.c.bf16 %v124_v19, %v123_v17  ;;  %v1157_v23 = vpack.c.bf16 %v126_v22, %v125_v21  ;;  %v1589_v24 = vand.u32 127, %v131_v0 }
  0x59   :  { %1138 = vmatprep.subr.bf16.mxu1 %v1353_v1 }
  0x5a   :  { %173 = vbcast.lane.b32.xlu1 %v171_v26, 256  ;;  %166 = vbcast.lane.b32.xlu0 %v164_v27, 256 }
  0x5b   :  { %1122 = vmatpush3.bf16.msra.mxu0 %v1121_v33 }
  0x5c   :  { %1123 = vmatprep.subr.bf16.mxu0 %v1353_v1  ;;  %1140 = vmatpush3.bf16.msra.mxu1 %v1139_v4 }
  0x5d   :  { %1141 = vmatprep.subr.bf16.mxu1 %v1353_v1 }
  0x5e   :  { %187 = vbcast.lane.b32.xlu1 %v185_v34, 256  ;;  %180 = vbcast.lane.b32.xlu0 %v178_v35, 256 }
  0x5f   :  { %1125 = vmatpush3.bf16.msra.mxu0 %v1124_v39 }
  0x60   :  { %1126 = vmatprep.subr.bf16.mxu0 %v1353_v1  ;;  %1143 = vmatpush3.bf16.msra.mxu1 %v1142_v6 }
  0x61   :  { %1144 = vmatprep.subr.bf16.mxu1 %v1353_v1 }
  0x62   :  { %488 = vbcast.lane.b32.xlu0 %v486_v40, 256  ;;  %495 = vbcast.lane.b32.xlu1 %v493_v41, 256 }
  0x63   :  { %1128 = vmatpush3.bf16.msra.mxu0 %v1127_v44 }
  0x64   :  { %1129 = vmatprep.subr.bf16.mxu0 %v1353_v1  ;;  %1146 = vmatpush3.bf16.msra.mxu1 %v1145_v11 }
  0x65   :  { %1147 = vmatprep.subr.bf16.mxu1 %v1353_v1 }
  0x66   :  { %502 = vbcast.lane.b32.xlu0 %v500_v45, 256  ;;  %509 = vbcast.lane.b32.xlu1 %v507_v46, 256 }
  0x67   :  { %1131 = vmatpush3.bf16.msra.mxu0 %v1130_v50 }
  0x68   :  { %1132 = vmatprep.subr.bf16.mxu0 %v1353_v1  ;;  %1149 = vmatpush3.bf16.msra.mxu1 %v1148_v14 }
  0x69   :  { %1150 = vmatprep.subr.bf16.mxu1 %v1353_v1 }
  0x6a   :  { %516 = vbcast.lane.b32.xlu0 %v514_v51, 256  ;;  %523 = vbcast.lane.b32.xlu1 %v521_v52, 256 }
  0x6b   :  { %1134 = vmatpush3.bf16.msra.mxu0 %v1133_v55 }
  0x6c   :  { %1159 = vmatprep.subr.bf16.mxu0 %v1353_v1  ;;  %1152 = vmatpush3.bf16.msra.mxu1 %v1151_v18 }
  0x6d   :  { %1153 = vmatprep.subr.bf16.mxu1 %v1353_v1 }
  0x6e   :  { %530 = vbcast.lane.b32.xlu0 %v528_v56, 256  ;;  %537 = vbcast.lane.b32.xlu1 %v535_v57, 256 }
  0x70   :  { %1155 = vmatpush3.bf16.msra.mxu1 %v1154_v20 }
  0x71   :  { %1156 = vmatprep.subr.bf16.mxu1 %v1353_v1 }
  0x74   :  { %1158 = vmatpush3.bf16.msra.mxu1 %v1157_v23 }
  0x75   :  { %1183 = vmatprep.subr.bf16.mxu1 %v1353_v1 }
  0x8d   :  { %263 = vadd.xlane.f32.xlu0 %v262_v2 }
  0x92   :  { %612 = vadd.xlane.f32.xlu1 %v611_v8 }
  0xc4   :  { %v153_v25 = vpop.permute.xlu1 %152  ;;  %v139_v26 = vpop.permute.xlu0 %138 }
  0xc5   :  { %vm191_vm4 = vcmp.eq.s32.totalorder %v153_v25, %v1589_v24  ;;  %vm189_vm5 = vcmp.eq.s32.totalorder %v139_v26, %v1589_v24 }
  0xc6   :  { %v880_v27 = vsel %vm191_vm4, 1.0, %v1355_v49  ;;  %v878_v28 = vsel %vm189_vm5, 1.0, %v1355_v49  ;;  %vm280_vm4 = vcmask 1043459  }
  0xc7   :  { %v213_v29 = vrot.slane %v878_v28, 4  ;;  %v225_v32 = vrot.slane %v880_v27, 4 }
  0xc8   :  { %v160_v30 = vpop.permute.xlu1 %159  ;;  %v146_v31 = vpop.permute.xlu0 %145 }
  0xc9   :  { %vm192_vm6 = vcmp.eq.s32.totalorder %v160_v30, %v1589_v24  ;;  %vm190_vm7 = vcmp.eq.s32.totalorder %v146_v31, %v1589_v24  ;;  %v214_v34 = vadd.f32 %v878_v28, %v213_v29  ;;  %v226_v39 = vadd.f32 %v880_v27, %v225_v32 }
  0xca   :  { %v881_v0 = vsel %vm192_vm6, 1.0, %v1355_v49  ;;  %v879_v33 = vsel %vm190_vm7, 1.0, %v1355_v49  ;;  %vm282_vm6 = vcmask 1044484   ;;  %vm284_vm7 = vcmask 1045509  }
  0xcb   :  { %v231_v35 = vrot.slane %v881_v0, 4  ;;  %v219_v36 = vrot.slane %v879_v33, 4  ;;  %v215_v41 = vrot.slane %v214_v34, 2  ;;  %v227_v48 = vrot.slane %v226_v39, 2 }
  0xcc   :  { %v174_v37 = vpop.permute.xlu1 %173  ;;  %v167_v38 = vpop.permute.xlu0 %166 }
  0xcd   :  { %v220_v40 = vadd.f32 %v879_v33, %v219_v36  ;;  %vm194_vm8 = vcmp.eq.s32.totalorder %v174_v37, %v1589_v24  ;;  %vm193_vm9 = vcmp.eq.s32.totalorder %v167_v38, %v1589_v24  ;;  %v232_v42 = vadd.f32 %v881_v0, %v231_v35 }
  0xce   :  { %v883_v44 = vsel %vm194_vm8, 1.0, %v1355_v49  ;;  %v882_v45 = vsel %vm193_vm9, 1.0, %v1355_v49  ;;  %v216_v53 = vadd.f32 %v215_v41, %v214_v34  ;;  %v228_v63 = vadd.f32 %v227_v48, %v226_v39 }
  0xcf   :  { %v221_v43 = vrot.slane %v220_v40, 2  ;;  %v243_v51 = vrot.slane %v883_v44, 4  ;;  %v237_v52 = vrot.slane %v882_v45, 4  ;;  %v233_v54 = vrot.slane %v232_v42, 2 }
  0xd0   :  { %v188_v46 = vpop.permute.xlu1 %187  ;;  %v181_v47 = vpop.permute.xlu0 %180  ;;  %v217_v8 = vrot.slane %v216_v53, 1  ;;  %v229_v16 = vrot.slane %v228_v63, 1  ;;  %vm286_vm8 = vcmask 1046534  }
  0xd1   :  { %v222_v50 = vadd.f32 %v221_v43, %v220_v40  ;;  %vm196_vm10 = vcmp.eq.s32.totalorder %v188_v46, %v1589_v24  ;;  %vm195_vm11 = vcmp.eq.s32.totalorder %v181_v47, %v1589_v24  ;;  %v244_v57 = vadd.f32 %v883_v44, %v243_v51  ;;  %v447_v44 = vld [vmem:[#allocation6] sm:$0xff] }
  0xd2   :  { %v885_v55 = vsel %vm196_vm10, 1.0, %v1355_v49  ;;  %v884_v56 = vsel %vm195_vm11, 1.0, %v1355_v49  ;;  %v238_v58 = vadd.f32 %v882_v45, %v237_v52  ;;  %v234_v6 = vadd.f32 %v233_v54, %v232_v42  ;;  %v448_v45 = vld [vmem:[#allocation6 + $0x8] sm:$0xff] }
  0xd3   :  { %v255_v59 = vrot.slane %v885_v55, 4  ;;  %v249_v60 = vrot.slane %v884_v56, 4  ;;  %v223_v2 = vrot.slane %v222_v50, 1  ;;  %v245_v3 = vrot.slane %v244_v57, 2 }
  0xd4   :  { %v489_v61 = vpop.permute.xlu0 %488  ;;  %v496_v62 = vpop.permute.xlu1 %495  ;;  %v239_v4 = vrot.slane %v238_v58, 2  ;;  %v218_v20 = vadd.f32 %v217_v8, %v216_v53  ;;  %v235_v21 = vrot.slane %v234_v6, 1  ;;  %v230_v31 = vadd.f32 %v229_v16, %v228_v63 }
  0xd5   :  { %vm539_vm12 = vcmp.eq.s32.totalorder %v489_v61, %v1589_v24  ;;  %v256_v5 = vadd.f32 %v885_v55, %v255_v59  ;;  %v250_v7 = vadd.f32 %v884_v56, %v249_v60  ;;  %vm540_vm13 = vcmp.eq.s32.totalorder %v496_v62, %v1589_v24 }
  0xd6   :  { %v240_v9 = vadd.f32 %v239_v4, %v238_v58  ;;  %v887_v12 = vsel %vm539_vm12, 1.0, %v1355_v49  ;;  %v224_v14 = vadd.f32 %v223_v2, %v222_v50  ;;  %v246_v15 = vadd.f32 %v245_v3, %v244_v57  ;;  %v449_v57 = vld [vmem:[#allocation6 + $0x10] sm:$0xff]  ;;  %v450_v58 = vld [vmem:[#allocation6 + $0x18] sm:$0xff] }
  0xd7   :  { %v257_v10 = vrot.slane %v256_v5, 2  ;;  %v251_v11 = vrot.slane %v250_v7, 2  ;;  %v888_v18 = vsel %vm540_vm13, 1.0, %v1355_v49  ;;  %v563_v23 = vrot.slane %v887_v12, 4 }
  0xd8   :  { %v503_v13 = vpop.permute.xlu0 %502  ;;  %v510_v19 = vpop.permute.xlu1 %509  ;;  %v241_v25 = vrot.slane %v240_v9, 1  ;;  %v277_v26 = vsel %vm276_vm14, %v224_v14, %v218_v20  ;;  %v247_v27 = vrot.slane %v246_v15, 1  ;;  %v569_v28 = vrot.slane %v888_v18, 4 }
  0xd9   :  { %v252_v17 = vadd.f32 %v251_v11, %v250_v7  ;;  %vm541_vm15 = vcmp.eq.s32.totalorder %v503_v13, %v1589_v24  ;;  %v258_v22 = vadd.f32 %v257_v10, %v256_v5  ;;  %vm542_vm1 = vcmp.eq.s32.totalorder %v510_v19, %v1589_v24  ;;  %v451_v10 = vld [vmem:[#allocation6 + $0x20] sm:$0xff]  ;;  %v452_v11 = vld [vmem:[#allocation6 + $0x28] sm:$0xff] }
  0xda   :  { %v889_v29 = vsel %vm541_vm15, 1.0, %v1355_v49  ;;  %v236_v0 = vadd.f32 %v235_v21, %v234_v6  ;;  %v564_v34 = vadd.f32 %v887_v12, %v563_v23  ;;  %v890_v35 = vsel %vm542_vm1, 1.0, %v1355_v49  ;;  %v454_v21 = vld [vmem:[#allocation6 + $0x38] sm:$0xff] }
  0xdb   :  { %v253_v32 = vrot.slane %v252_v17, 1  ;;  %v259_v33 = vrot.slane %v258_v22, 1  ;;  %v242_v36 = vadd.f32 %v241_v25, %v240_v9  ;;  %v575_v37 = vrot.slane %v889_v29, 4 }
  0xdc   :  { %v517_v30 = vpop.permute.xlu0 %516  ;;  %v524_v38 = vpop.permute.xlu1 %523  ;;  %v279_v39 = vsel %vm278_vm0, %v230_v31, %v277_v26  ;;  %v248_v40 = vadd.f32 %v247_v27, %v246_v15  ;;  %v570_v41 = vadd.f32 %v888_v18, %v569_v28  ;;  %v581_v46 = vrot.slane %v890_v35, 4 }
  0xdd   :  { %vm543_vm5 = vcmp.eq.s32.totalorder %v517_v30, %v1589_v24  ;;  %v254_v42 = vadd.f32 %v253_v32, %v252_v17  ;;  %v281_v43 = vsel %vm280_vm4, %v236_v0, %v279_v39  ;;  %vm544_vm9 = vcmp.eq.s32.totalorder %v524_v38, %v1589_v24  ;;  %v455_v32 = vld [vmem:[#allocation6 + $0x40] sm:$0xff]  ;;  %v456_v0 = vld [vmem:[#allocation6 + $0x48] sm:$0xff] }
  0xde   :  { %v891_v47 = vsel %vm543_vm5, 1.0, %v1355_v49  ;;  %v260_v48 = vadd.f32 %v259_v33, %v258_v22  ;;  %v565_v51 = vrot.slane %v564_v34, 2  ;;  %v576_v52 = vadd.f32 %v889_v29, %v575_v37 }
  0xdf   :  { %v283_v53 = vsel %vm282_vm6, %v242_v36, %v281_v43  ;;  %vm288_vm10 = vcmask 1047559   ;;  %v571_v54 = vrot.slane %v570_v41, 2  ;;  %v1160_v56 = vpack.c.bf16 %v448_v45, %v447_v44 }
  0xe0   :  { %v531_v50 = vpop.permute.xlu0 %530  ;;  %v285_v55 = vsel %vm284_vm7, %v248_v40, %v283_v53  ;;  %v587_v59 = vrot.slane %v891_v47, 4  ;;  %v892_v60 = vsel %vm544_vm9, 1.0, %v1355_v49  ;;  %v538_v62 = vpop.permute.xlu1 %537  ;;  %v582_v63 = vadd.f32 %v890_v35, %v581_v46 }
  0xe1   :  { %v287_v61 = vsel %vm286_vm8, %v254_v42, %v285_v55  ;;  %vm545_vm11 = vcmp.eq.s32.totalorder %v531_v50, %v1589_v24  ;;  %v566_v3 = vadd.f32 %v565_v51, %v564_v34  ;;  %v577_v4 = vrot.slane %v576_v52, 2  ;;  %v458_v42 = vld [vmem:[#allocation6 + $0x58] sm:$0xff]  ;;  %v459_v51 = vld [vmem:[#allocation6 + $0x60] sm:$0xff] }
  0xe2   :  { %v289_v2 = vsel %vm288_vm10, %v260_v48, %v287_v61  ;;  %v1163_v5 = vpack.c.bf16 %v450_v58, %v449_v57  ;;  %v572_v7 = vadd.f32 %v571_v54, %v570_v41  ;;  %v593_v8 = vrot.slane %v892_v60, 4  ;;  %v457_v41 = vld [vmem:[#allocation6 + $0x50] sm:$0xff] }
  0xe3   :  { %999 = vmatmul.mubr.f32.vlgmr.msra.gmra.mrb[0].mxu0 %v289_v2  ;;  %v893_v6 = vsel %vm545_vm11, 1.0, %v1355_v49  ;;  %vm546_vm12 = vcmp.eq.s32.totalorder %v538_v62, %v1589_v24  ;;  %v588_v9 = vadd.f32 %v891_v47, %v587_v59  ;;  %v583_v12 = vrot.slane %v582_v63, 2  ;;  %v453_v24 = vld [vmem:[#allocation6 + $0x30] sm:$0xff]  ;;  %v462_v59 = vld [vmem:[#allocation6 + $0x78] sm:$0xff] }
  0xe4   :  { %1161 = vmatpush3.bf16.msra.mxu0 %v1160_v56  ;;  %1068 = vmatprep.mubr.msk.f32.mxu0 %vm1354_vm2, %v1355_v49  ;;  %v578_v13 = vadd.f32 %v577_v4, %v576_v52  ;;  %v599_v14 = vrot.slane %v893_v6, 4  ;;  %v894_v15 = vsel %vm546_vm12, 1.0, %v1355_v49  ;;  %v567_v16 = vrot.slane %v566_v3, 1  ;;  %v460_v52 = vld [vmem:[#allocation6 + $0x68] sm:$0xff]  ;;  %v461_v58 = vld [vmem:[#allocation6 + $0x70] sm:$0xff] }
  0xe5   :  { %1162 = vmatprep.subr.bf16.mxu0 %v1353_v1  ;;  %v573_v17 = vrot.slane %v572_v7, 1  ;;  %v594_v18 = vadd.f32 %v892_v60, %v593_v8  ;;  %v1166_v19 = vpack.c.bf16 %v452_v11, %v451_v10  ;;  %v589_v20 = vrot.slane %v588_v9, 2 }
  0xe6   :  { %v584_v22 = vadd.f32 %v583_v12, %v582_v63  ;;  %v605_v23 = vrot.slane %v894_v15, 4  ;;  %v579_v25 = vrot.slane %v578_v13, 1  ;;  %v600_v26 = vadd.f32 %v893_v6, %v599_v14  ;;  %v463_v6 = vld [vmem:[#allocation8] sm:$0xff] }
  0xe7   :  { %v568_v27 = vadd.f32 %v567_v16, %v566_v3  ;;  %v574_v28 = vadd.f32 %v573_v17, %v572_v7  ;;  %v595_v29 = vrot.slane %v594_v18, 2  ;;  %v1169_v30 = vpack.c.bf16 %v454_v21, %v453_v24  ;;  %v466_v16 = vld [vmem:[#allocation8 + $0x18] sm:$0xff]  ;;  %v469_v24 = vld [vmem:[#allocation8 + $0x30] sm:$0xff] }
  0xe8   :  { %1164 = vmatpush3.bf16.msra.mxu0 %v1163_v5  ;;  %v590_v31 = vadd.f32 %v589_v20, %v588_v9  ;;  %v585_v33 = vrot.slane %v584_v22, 1  ;;  %v606_v34 = vadd.f32 %v894_v15, %v605_v23  ;;  %v580_v35 = vadd.f32 %v579_v25, %v578_v13  ;;  %v464_v9 = vld [vmem:[#allocation8 + $0x8] sm:$0xff]  ;;  %v465_v15 = vld [vmem:[#allocation8 + $0x10] sm:$0xff]  ;;  %v470_v21 = vld [vmem:[#allocation8 + $0x38] sm:$0xff] }
  0xe9   :  { %1165 = vmatprep.subr.bf16.mxu0 %v1353_v1  ;;  %v601_v36 = vrot.slane %v600_v26, 2  ;;  %v625_v37 = vsel %vm276_vm14, %v574_v28, %v568_v27  ;;  %v596_v38 = vadd.f32 %v595_v29, %v594_v18  ;;  %v1172_v39 = vpack.c.bf16 %v456_v0, %v455_v32  ;;  %v467_v18 = vld [vmem:[#allocation8 + $0x20] sm:$0xff]  ;;  %v473_v28 = vld [vmem:[#allocation8 + $0x50] sm:$0xff]  ;;  %v474_v29 = vld [vmem:[#allocation8 + $0x58] sm:$0xff] }
  0xea   :  { %v591_v40 = vrot.slane %v590_v31, 1  ;;  %v586_v43 = vadd.f32 %v585_v33, %v584_v22  ;;  %v607_v44 = vrot.slane %v606_v34, 2  ;;  %v626_v45 = vsel %vm278_vm0, %v580_v35, %v625_v37  ;;  %v471_v25 = vld [vmem:[#allocation8 + $0x40] sm:$0xff]  ;;  %v476_v32 = vld [vmem:[#allocation8 + $0x68] sm:$0xff]  ;;  %v477_v33 = vld [vmem:[#allocation8 + $0x70] sm:$0xff] }
  0xeb   :  { %v602_v46 = vadd.f32 %v601_v36, %v600_v26  ;;  %v597_v47 = vrot.slane %v596_v38, 1  ;;  %v1175_v48 = vpack.c.bf16 %v458_v42, %v457_v41  ;;  %v1178_v57 = vpack.c.bf16 %v460_v52, %v459_v51  ;;  %v472_v26 = vld [vmem:[#allocation8 + $0x48] sm:$0xff]  ;;  %v886_v42 = vld [vmem:[%s1684_s7] ss:$0 sm:$0xff] }
  0xec   :  { %1167 = vmatpush3.bf16.msra.mxu0 %v1166_v19  ;;  %v592_v50 = vadd.f32 %v591_v40, %v590_v31  ;;  %v627_v53 = vsel %vm280_vm4, %v586_v43, %v626_v45  ;;  %v608_v54 = vadd.f32 %v607_v44, %v606_v34  ;;  %v1181_v63 = vpack.c.bf16 %v462_v59, %v461_v58  ;;  %v468_v19 = vld [vmem:[#allocation8 + $0x28] sm:$0xff]  ;;  %v475_v31 = vld [vmem:[#allocation8 + $0x60] sm:$0xff]  ;;  %v478_v34 = vld [vmem:[#allocation8 + $0x78] sm:$0xff] }
  0xed   :  { %1168 = vmatprep.subr.bf16.mxu0 %v1353_v1  ;;  %v603_v55 = vrot.slane %v602_v46, 1  ;;  %v598_v56 = vadd.f32 %v597_v47, %v596_v38  ;;  %v1184_v12 = vpack.c.bf16 %v464_v9, %v463_v6  ;;  %v1187_v17 = vpack.c.bf16 %v466_v16, %v465_v15  ;;  %v895_v43 = vld [vmem:[#allocation9] ss:$0 sm:$0xff] }
  0xee   :  { %v628_v60 = vsel %vm282_vm6, %v592_v50, %v627_v53  ;;  %v609_v61 = vrot.slane %v608_v54, 1  ;;  %v1190_v20 = vpack.c.bf16 %v468_v19, %v467_v18  ;;  %v1193_v22 = vpack.c.bf16 %v470_v21, %v469_v24 }
  0xef   :  { %v604_v62 = vadd.f32 %v603_v55, %v602_v46  ;;  %v629_v2 = vsel %vm284_vm7, %v598_v56, %v628_v60  ;;  %v1202_v0 = vpack.c.bf16 %v476_v32, %v475_v31  ;;  %v1205_v35 = vpack.c.bf16 %v478_v34, %v477_v33 }
  0xf0   :  { %1170 = vmatpush3.bf16.msra.mxu0 %v1169_v30  ;;  %v610_v3 = vadd.f32 %v609_v61, %v608_v54  ;;  %v1199_v30 = vpack.c.bf16 %v474_v29, %v473_v28  ;;  %v788_v59 = vstv %s1677_s0 }
  0xf1   :  { %1171 = vmatprep.subr.bf16.mxu0 %v1353_v1  ;;  %v630_v4 = vsel %vm286_vm8, %v604_v62, %v629_v2 }
  0xf2   :  { %v631_v5 = vsel %vm288_vm10, %v610_v3, %v630_v4 }
  0xf4   :  { %1173 = vmatpush3.bf16.msra.mxu0 %v1172_v39 }
  0xf5   :  { %1174 = vmatprep.subr.bf16.mxu0 %v1353_v1 }
  0xf8   :  { %1176 = vmatpush3.bf16.msra.mxu0 %v1175_v48 }
  0xf9   :  { %1177 = vmatprep.subr.bf16.mxu0 %v1353_v1 }
  0xfc   :  { %1179 = vmatpush3.bf16.msra.mxu0 %v1178_v57 }
  0xfd   :  { %1180 = vmatprep.subr.bf16.mxu0 %v1353_v1 }
 0x100   :  { %1182 = vmatpush3.bf16.msra.mxu0 %v1181_v63 }
 0x101   :  { %1106 = vmatprep.subr.mxu0 %v1355_v49 }
 0x103   :  { %1069 = vmatmul.mubr.f32.vlgmr.msra.gmra.mrb[2].mxu0 %v631_v5 }
 0x104   :  { %1108 = vmatprep.mubr.msk.f32.mxu0 %vm1354_vm2, %v1355_v49 }
 0x11a   :  { %v264_v7 = vpop.xlane.xlu0 %263 }
 0x11b   :  { %v265_v8 = vmax.f32 %v264_v7, 1.0 }
 0x11d   :  { %1217 = vrcp.f32 %v265_v8 }
 0x11f   :  { %v613_v23 = vpop.xlane.xlu1 %612 }
 0x120   :  { %v614_v27 = vmax.f32 %v613_v23, 1.0 }
 0x122   :  { %1219 = vrcp.f32 %v614_v27 }
 0x127   :  { %v1218_v10 = vpop.eup %1217 }
 0x12c   :  { %v1220_v36 = vpop.eup %1219 }
 0x1b6   :  { %v357_v11 = vpop.f32.mrb[0].mxu0 }
 0x1b7   :  { %v361_v13 = vmul.f32 %v1218_v10, %v357_v11  ;;  %v1000_v14 = vpop.f32.mrb[1].mxu0 }
 0x1b9   :  { %1034 = vmatmul.mubr.f32.vlgmr.msra.gmra.mrb[0].mxu1 %v361_v13 }
 0x1ba   :  { %1185 = vmatpush3.bf16.msra.mxu1 %v1184_v12  ;;  %1103 = vmatprep.mubr.msk.f32.mxu1 %vm1354_vm2, %v1355_v49  ;;  %v1196_v49 = vpack.c.bf16 %v472_v26, %v471_v25 }
 0x1bb   :  { %1186 = vmatprep.subr.bf16.mxu1 %v1353_v1 }
 0x1be   :  { %1188 = vmatpush3.bf16.msra.mxu1 %v1187_v17 }
 0x1bf   :  { %1189 = vmatprep.subr.bf16.mxu1 %v1353_v1 }
 0x1c2   :  { %1191 = vmatpush3.bf16.msra.mxu1 %v1190_v20 }
 0x1c3   :  { %1192 = vmatprep.subr.bf16.mxu1 %v1353_v1 }
 0x1c6   :  { %1194 = vmatpush3.bf16.msra.mxu1 %v1193_v22 }
 0x1c7   :  { %1195 = vmatprep.subr.bf16.mxu1 %v1353_v1 }
 0x1ca   :  { %1197 = vmatpush3.bf16.msra.mxu1 %v1196_v49 }
 0x1cb   :  { %1198 = vmatprep.subr.bf16.mxu1 %v1353_v1 }
 0x1ce   :  { %1200 = vmatpush3.bf16.msra.mxu1 %v1199_v30 }
 0x1cf   :  { %1201 = vmatprep.subr.bf16.mxu1 %v1353_v1 }
 0x1d2   :  { %1203 = vmatpush3.bf16.msra.mxu1 %v1202_v0 }
 0x1d3   :  { %1204 = vmatprep.subr.bf16.mxu1 %v1353_v1 }
 0x1d6   :  { %v699_v37 = vpop.f32.mrb[2].mxu0  ;;  %1206 = vmatpush3.bf16.msra.mxu1 %v1205_v35 }
 0x1d7   :  { %v703_v38 = vmul.f32 %v1220_v36, %v699_v37  ;;  %v1070_v39 = vpop.f32.mrb[3].mxu0 }
 0x1d9   :  { %1104 = vmatmul.mubr.f32.vlgmr.msra.gmra.mrb[2].mxu1 %v703_v38 }
 0x28c   :  { %v434_v40 = vpop.f32.mrb[0].mxu1 }
 0x28d   :  { %v1035_v41 = vpop.f32.mrb[1].mxu1  ;;  %v435_v45 = vadd.f32 %v886_v42, %v434_v40 }
 0x2ac   :  { %v776_v44 = vpop.f32.mrb[2].mxu1 }
 0x2ad   :  { %v777_v46 = vadd.f32 %v895_v43, %v776_v44  ;;  %v1105_v47 = vpop.f32.mrb[3].mxu1 }
 0x2af   :  { %1221 = vtanh.f32 %v777_v46 }
 0x2b0   :  { %1223 = vtanh.f32 %v435_v45 }
 0x2b9   :  { %v1222_v1 = vpop.eup %1221 }
 0x2ba   :  { %v781_v48 = vmul.f32 %v1222_v1, %v1222_v1  ;;  %v1224_v50 = vpop.eup %1223 }
 0x2bb   :  { %v439_v51 = vmul.f32 %v1224_v50, %v1224_v50 }
 0x2bc   :  { %782 = vadd.xlane.f32.xlu0 %v781_v48 }
 0x2c0   :  { %440 = vadd.xlane.f32.xlu0 %v439_v51 }
 0x349   :  { %v783_v52 = vpop.xlane.xlu0 %782 }
 0x34a   :  { %v784_v53 = vmax.f32 %v783_v52, 1e-24 }
 0x34c   :  { %1225 = vrsqrt.f32 %v784_v53 }
 0x34d   :  { %v441_v54 = vpop.xlane.xlu0 %440 }
 0x34e   :  { %v442_v55 = vmax.f32 %v441_v54, 1e-24 }
 0x350   :  { %1227 = vrsqrt.f32 %v442_v55 }
 0x356   :  { %v1226_v56 = vpop.eup %1225 }
 0x357   :  { %v786_v57 = vmul.f32 %v1226_v56, %v1222_v1 }
 0x359   :  { %1107 = vmatpush3.xpose.msra.mxu0 %v786_v57 }
 0x35a   :  { %v1228_v58 = vpop.eup %1227 }
 0x35b   :  { %v444_v60 = vmul.f32 %v1228_v58, %v1224_v50 }
 0x35d   :  { %v789_v61 = vmul.f32 %v788_v59, %v444_v60 }
 0x35f   :  { %1109 = vmatmul.mubr.f32.vlgmr.msra.gmra.mrb[4].mxu0 %v789_v61 }
 0x432   :  { %v856_v62 = vpop.f32.mrb[4].mxu0 }
 0x433   :  { %860 = vst.msk [vmem:[#allocation11] sm:$0xff] %vm261_vm3, %v856_v62  ;;  %v1110_v63 = vpop.f32.mrb[5].mxu0 }
 0x434   :  { %1328 = shalt.err (!%p1325_p8)
}
 0x435   :  { %s1329_s0 = scalar_lea.hbm %s1688_s11, 128 }
 0x436   :  { %p1330_p9 = scmp.ne.s32.totalorder %s1688_s11, %s1329_s0  ;;  %p1333_p10 = scmp.lt.u32.totalorder %s1329_s0, %s1688_s11 }
 0x438   :  { %p1335_p11 = pnand %p1333_p10, %p1330_p9 }
 0x43a   :  { %1338 = shalt.err (!%p1335_p11)
}
 0x43b   :  { %870 = dma.vmem_to_hbm [thread:$0]  %s868_s23, 128, %s1688_s11, [#allocation5]  }
 0x43c   :  { %1345 = dma.done.wait [#allocation5], 128  }
 0x43d   :  { %1346 = vsyncadd [#allocation5], 4294967168 }
 0x43e   :  { %874 = vsyncpa [#allocation4], 1 }
 0x43f   :  { %875 = vsyncpa [#allocation7], 1 }
 0x440   :  { %876 = vsyncpa [#allocation10], 1 }
 0x441   :  { %877 = vsyncpa [#allocation5], 1 }

</bundles_post_ra>
